<compile_context>
chip_gen: v6e
topology: v6e:2x2x1
jax: 0.10.0
libtpu: 0.0.40
codegen_flags: <defaults>
</compile_context>

<pallas_src>
import functools

import jax
import jax.numpy as jnp
from jax import lax
from jax.experimental import pallas as pl
from jax.experimental.pallas import tpu as pltpu

K = 3          # kernel size ('none-3' branch)
PAD = 1        # padding
EPS = 1e-5     # InstanceNorm2d default eps
WINSIZE = float(K * K)


def _fconv_kernel(comb_ref, vmask_ref, w_ref, oopt_ref, osar_ref, omask_ref,
                  *, co, cs, h, w, wp):
    # comb_ref:  (1, Cc, Hp*Wp + K-1)  bf16  [opt*m | sar*(1-m) | sar | m], 0-pad
    # vmask_ref: (1, H*Wp)             f32   1.0 on valid (x < W) columns
    # w_ref:     (K*K, Ct+1, Cc)       bf16  block weight (+ mask-sum row)
    # oopt_ref:  (1, Co, H*Wp)         f32   InstanceNorm+ReLU of conv1 output
    # osar_ref:  (1, Cs, H*Wp)         f32   InstanceNorm+ReLU of conv2 output
    # omask_ref: (1, 1,  H*Wp)         f32   max-pooled mask
    ct = co + cs
    s = h * wp                         # flattened (padded-width) output length
    cc = comb_ref.shape[1]
    lpb = comb_ref.shape[2]

    vmask = vmask_ref[...]             # (1, S)

    # --- 3x3 conv (stride 1, pad 1): 9 tap matmuls on the flattened stream.
    # Each tap is a static lane-offset slice; one dot produces conv1 rows,
    # conv2 rows and the sum_weight row simultaneously.  Accumulate in a JAX
    # value -> single accumulator materialization (MRB accumulate on v7x).
    acc = None
    for dy in range(K):
        for dx in range(K):
            k = dy * K + dx
            off = dy * wp + dx
            rhs = comb_ref[0, :, off:off + s]                 # (Cc, S) bf16
            part = jnp.dot(w_ref[k], rhs,
                           preferred_element_type=jnp.float32)  # (Ct+1, S)
            acc = part if acc is None else acc + part

    # --- Partial-conv renormalization (opt rows only) + pad-column masking.
    sumw = acc[ct:ct + 1, :]                                  # (1, S)
    ratio = (2.0 * WINSIZE) * pl.reciprocal(WINSIZE + sumw, approx=True)
    conv_opt = acc[:co, :] * (ratio * vmask)                  # (Co, S)
    conv_sar = acc[co:ct, :] * vmask                          # (Cs, S)

    # --- InstanceNorm2d (per channel, no affine, biased var) + ReLU.
    # Two-pass variance in f32 (no E[x^2]-E[x]^2 cancellation).
    inv_n = 1.0 / float(h * w)
    mean_opt = jnp.sum(conv_opt, axis=1, keepdims=True) * inv_n
    mean_sar = jnp.sum(conv_sar, axis=1, keepdims=True) * inv_n
    cen_opt = conv_opt - mean_opt
    cen_sar = conv_sar - mean_sar
    var_opt = jnp.sum((cen_opt * vmask) ** 2, axis=1, keepdims=True) * inv_n
    var_sar = jnp.sum((cen_sar * vmask) ** 2, axis=1, keepdims=True) * inv_n
    oopt_ref[0] = jnp.maximum(cen_opt * lax.rsqrt(var_opt + EPS),
                              0.0).astype(oopt_ref.dtype)
    osar_ref[0] = jnp.maximum(cen_sar * lax.rsqrt(var_sar + EPS),
                              0.0).astype(osar_ref.dtype)

    # --- F.max_pool2d(mask, 3, stride=1, padding=1), separable max.
    # Mask row of the stream is zero-padded; for masks >= 0 this equals the
    # reference's -inf padding.  (bf16 is exact for binary masks.)
    mrow = comb_ref[0, cc - 1:cc, :].astype(jnp.float32)      # (1, Lpb)
    rm = jnp.maximum(jnp.maximum(mrow[:, 0:lpb - 2], mrow[:, 1:lpb - 1]),
                     mrow[:, 2:lpb])                          # row (x) max
    mp = rm[:, 0:s]
    mp = jnp.maximum(mp, rm[:, wp:wp + s])
    mp = jnp.maximum(mp, rm[:, 2 * wp:2 * wp + s])            # column (y) max
    omask_ref[0] = mp.astype(omask_ref.dtype)


@jax.jit
def fconv_bn_activ(images_opt, images_sar, masks, w1, w2):
    """FConvBNActiv forward.

    images_opt: (N, Ci_opt, H, W)   images_sar: (N, Ci_sar, H, W)
    masks:      (N, 1, H, W)
    w1: conv1 weight (Co_opt, Ci_opt+Ci_sar, K, K)  (PyTorch OIHW)
    w2: conv2 weight (Co_sar, Ci_sar, K, K)
    Returns (opt_out (N,Co_opt,H,W), sar_out (N,Co_sar,H,W), mask_out (N,1,H,W))
    """
    N, Ci_opt, H, W = images_opt.shape
    Ci_sar = images_sar.shape[1]
    Co = w1.shape[0]
    Cs = w2.shape[0]
    Ci1 = Ci_opt + Ci_sar
    Cc = Ci1 + Ci_sar + 1
    Ct = Co + Cs
    Hp, Wp = H + 2 * PAD, W + 2 * PAD
    Lp = Hp * Wp                      # flattened padded image length
    Lpb = Lp + (K - 1)                # + tail so the last taps stay in range
    S = H * Wp                        # flattened output length (2 pad cols/row)

    opt = images_opt.astype(jnp.float32)
    sar = images_sar.astype(jnp.float32)
    m = masks.astype(jnp.float32)                         # (N, 1, H, W)

    # Fused, zero-padded, flattened bf16 stream (masking math in f32 by XLA,
    # fused with the pad/reshape).  Channel-first == native NCHW: no transpose.
    combined = jnp.concatenate([opt * m, sar * (1.0 - m), sar, m], axis=1)
    combined = jnp.pad(combined, ((0, 0), (0, 0), (PAD, PAD), (PAD, PAD)))
    combined = combined.reshape(N, Cc, Lp)
    combined = jnp.pad(combined, ((0, 0), (0, 0), (0, K - 1)))
    combined = combined.astype(jnp.bfloat16)
    # TODO(synk): on v5e, slim the stream to [opt*m | sar | m] (compute
    # sar*(1-m) in-kernel) and optionally emit bf16 outputs to cut HBM traffic.

    # Valid-column mask (x < W) for the flattened padded-width layout.
    vmask = jnp.broadcast_to(
        (jnp.arange(Wp) < W).astype(jnp.float32)[None, :], (H, Wp)
    ).reshape(1, S)

    # Block-structured weight (K*K, Ct+1, Cc):
    #   rows [0, Co)      x cols [0, Ci1)           -> conv1 (opt outputs)
    #   rows [Co, Ct)     x cols [Ci1, Ci1+Ci_sar)  -> conv2 (sar outputs)
    #   row  Ct           x col  Cc-1 (mask)        -> sum_weight (ones kernel)
    w1t = jnp.transpose(w1.astype(jnp.float32), (2, 3, 0, 1)).reshape(
        K * K, Co, Ci1)
    w2t = jnp.transpose(w2.astype(jnp.float32), (2, 3, 0, 1)).reshape(
        K * K, Cs, Ci_sar)
    wbig = jnp.zeros((K * K, Ct + 1, Cc), jnp.float32)
    wbig = wbig.at[:, :Co, :Ci1].set(w1t)
    wbig = wbig.at[:, Co:Ct, Ci1:Ci1 + Ci_sar].set(w2t)
    wbig = wbig.at[:, Ct, Cc - 1].set(1.0)
    wbig = wbig.astype(jnp.bfloat16)

    # Generation-aware VMEM request (double-buffered blocks + temporaries)
    # with ~22% headroom below physical capacity.
    in_blk = Cc * Lpb * 2 + S * 4 + K * K * (Ct + 1) * Cc * 2
    out_blk = (Ct + 1) * S * 4
    acc_blk = (Ct + 1) * S * 4
    needed = 2 * (in_blk + out_blk) + 8 * acc_blk
    try:
        cap = int(pltpu.get_tpu_info().vmem_capacity_bytes)
    except Exception:  # pragma: no cover - conservative fallback
        cap = 64 * 1024 * 1024
    vmem_limit = int(min(int(cap * 0.78), max(32 * 1024 * 1024, needed)))
    # TODO(synk): for very large images (per-batch block > VMEM budget, e.g.
    # >~560x560 on v7x) add an H-tile grid axis with a 2-row halo and carried
    # per-channel sum/sumsq InstanceNorm stats across tiles.

    oopt, osar, omask = pl.pallas_call(
        functools.partial(_fconv_kernel, co=Co, cs=Cs, h=H, w=W, wp=Wp),
        out_shape=(
            jax.ShapeDtypeStruct((N, Co, S), jnp.float32),
            jax.ShapeDtypeStruct((N, Cs, S), jnp.float32),
            jax.ShapeDtypeStruct((N, 1, S), jnp.float32),
        ),
        grid=(N,),
        in_specs=[
            pl.BlockSpec((1, Cc, Lpb), lambda n: (n, 0, 0)),
            pl.BlockSpec((1, S), lambda n: (0, 0)),
            pl.BlockSpec((K * K, Ct + 1, Cc), lambda n: (0, 0, 0)),
        ],
        out_specs=(
            pl.BlockSpec((1, Co, S), lambda n: (n, 0, 0)),
            pl.BlockSpec((1, Cs, S), lambda n: (n, 0, 0)),
            pl.BlockSpec((1, 1, S), lambda n: (n, 0, 0)),
        ),
        compiler_params=pltpu.CompilerParams(
            dimension_semantics=("parallel",),
            vmem_limit_bytes=vmem_limit),
    )(combined, vmask, wbig)

    # Free reshapes; the [:, ..., :W] slice drops the 2 pad columns per row.
    out_opt = oopt.reshape(N, Co, H, Wp)[..., :W]
    out_sar = osar.reshape(N, Cs, H, Wp)[..., :W]
    out_mask = omask.reshape(N, 1, H, Wp)[..., :W]
    return out_opt, out_sar, out_mask


def _reference(images_opt, images_sar, masks, w1, w2):
    """Pure-JAX reference (mirrors the PyTorch forward, NCHW)."""
    dn = ("NCHW", "OIHW", "NCHW")
    hp = lax.Precision.HIGHEST
    ones = jnp.ones((1, 1, K, K), jnp.float32)
    pads = ((PAD, PAD), (PAD, PAD))

    sum_weight = lax.conv_general_dilated(masks, ones, (1, 1), pads,
                                          dimension_numbers=dn, precision=hp)
    fused = jnp.concatenate([images_opt * masks,
                             images_sar * (1.0 - masks)], axis=1)
    m_out = lax.conv_general_dilated(fused, w1, (1, 1), pads,
                                     dimension_numbers=dn, precision=hp)
    m_out = m_out * (2.0 * WINSIZE / (WINSIZE + sum_weight))
    s_out = lax.conv_general_dilated(images_sar, w2, (1, 1), pads,
                                     dimension_numbers=dn, precision=hp)
    mpool = lax.reduce_window(masks, -jnp.inf, lax.max,
                              (1, 1, K, K), (1, 1, 1, 1),
                              ((0, 0), (0, 0), (PAD, PAD), (PAD, PAD)))
    imgs = jnp.concatenate([m_out, s_out], axis=1)
    mean = imgs.mean(axis=(2, 3), keepdims=True)
    var = ((imgs - mean) ** 2).mean(axis=(2, 3), keepdims=True)
    imgs = jnp.maximum((imgs - mean) / jnp.sqrt(var + EPS), 0.0)
    co = w1.shape[0]
    return imgs[:, :co], imgs[:, co:], mpool


if __name__ == "__main__":
    # Small deterministic example (PyTorch NCHW convention).
    N, Ci_opt, Ci_sar, Co_opt, Co_sar, H, W = 2, 4, 3, 6, 4, 16, 16

    key = jax.random.PRNGKey(0)
    k_opt, k_sar, k_mask, k_w1, k_w2 = jax.random.split(key, 5)

    images_opt = jax.random.normal(k_opt, (N, Ci_opt, H, W), jnp.float32)
    images_sar = jax.random.normal(k_sar, (N, Ci_sar, H, W), jnp.float32)
    masks = (jax.random.uniform(k_mask, (N, 1, H, W)) > 0.5).astype(jnp.float32)

    # Deterministic synthetic weights (shapes match nn.Conv2d in FusionConv2d).
    w1 = 0.1 * jax.random.normal(k_w1, (Co_opt, Ci_opt + Ci_sar, K, K),
                                 jnp.float32)
    w2 = 0.1 * jax.random.normal(k_w2, (Co_sar, Ci_sar, K, K), jnp.float32)

    out_opt, out_sar, out_mask = fconv_bn_activ(
        images_opt, images_sar, masks, w1, w2)
    jax.block_until_ready((out_opt, out_sar, out_mask))

    ref_opt, ref_sar, ref_mask = _reference(
        images_opt, images_sar, masks, w1, w2)

    assert out_opt.shape == (N, Co_opt, H, W)
    assert out_sar.shape == (N, Co_sar, H, W)
    assert out_mask.shape == (N, 1, H, W)
    # bf16 MXU inputs (f32 accumulation, f32 two-pass norm stats, approx recip
    # for the partial-conv ratio) -> slightly looser tolerance on the images.
    assert jnp.allclose(out_opt, ref_opt, atol=4e-2, rtol=4e-2)
    assert jnp.allclose(out_sar, ref_sar, atol=4e-2, rtol=4e-2)
    assert jnp.allclose(out_mask, ref_mask, atol=1e-5, rtol=1e-5)

    print("KERNEL_OK")
</pallas_src>

<mosaic_0001>
module attributes {stable_mosaic.version = 11 : i64} {
  func.func @_fconv_kernel(%arg0: i32, %arg1: memref<1x11x326xbf16, #tpu.memory_space<vmem>>, %arg2: memref<1x288xf32, #tpu.memory_space<vmem>>, %arg3: memref<9x11x11xbf16, #tpu.memory_space<vmem>>, %arg4: memref<1x6x288xf32, #tpu.memory_space<vmem>>, %arg5: memref<1x4x288xf32, #tpu.memory_space<vmem>>, %arg6: memref<1x1x288xf32, #tpu.memory_space<vmem>>) attributes {dimension_semantics = [#tpu.dimension_semantics<parallel>], iteration_bounds = array<i64: 2>, scalar_prefetch = 0 : i64, scratch_operands = 0 : i64, tpu.core_type = #tpu.core_type<tc>, window_params = [{transform_indices = @transform_0, window_bounds = array<i64: 1, 11, 326>}, {pipeline_mode = #tpu.pipeline_mode<synchronous>, transform_indices = @transform_1, window_bounds = array<i64: 1, 288>}, {pipeline_mode = #tpu.pipeline_mode<synchronous>, transform_indices = @transform_2, window_bounds = array<i64: 9, 11, 11>}, {transform_indices = @transform_3, window_bounds = array<i64: 1, 6, 288>}, {transform_indices = @transform_4, window_bounds = array<i64: 1, 4, 288>}, {transform_indices = @transform_5, window_bounds = array<i64: 1, 1, 288>}]} {
    %c0 = arith.constant 0 : index
    %c0_0 = arith.constant 0 : index
    %0 = vector.load %arg2[%c0, %c0_0] : memref<1x288xf32, #tpu.memory_space<vmem>>, vector<1x288xf32>
    %c0_1 = arith.constant 0 : index
    %c0_2 = arith.constant 0 : index
    %c0_3 = arith.constant 0 : index
    %1 = vector.load %arg1[%c0_1, %c0_2, %c0_3] : memref<1x11x326xbf16, #tpu.memory_space<vmem>>, vector<1x11x288xbf16>
    %2 = vector.shape_cast %1 : vector<1x11x288xbf16> to vector<11x288xbf16>
    %c0_4 = arith.constant 0 : index
    %c0_5 = arith.constant 0 : index
    %c0_6 = arith.constant 0 : index
    %3 = vector.load %arg3[%c0_4, %c0_5, %c0_6] : memref<9x11x11xbf16, #tpu.memory_space<vmem>>, vector<1x11x11xbf16>
    %4 = vector.shape_cast %3 : vector<1x11x11xbf16> to vector<11x11xbf16>
    %cst = arith.constant dense<0.000000e+00> : vector<11x288xf32>
    %5 = tpu.matmul %4, %2, %cst {dimension_numbers = #tpu.dot_dimension_numbers<[1], [0], [0], [1], [0, 0, 1, 1], [], []>} : vector<11x11xbf16>, vector<11x288xbf16>, vector<11x288xf32> -> vector<11x288xf32>
    %c0_7 = arith.constant 0 : index
    %c0_8 = arith.constant 0 : index
    %c1 = arith.constant 1 : index
    %6 = vector.load %arg1[%c0_7, %c0_8, %c1] : memref<1x11x326xbf16, #tpu.memory_space<vmem>>, vector<1x11x288xbf16>
    %7 = vector.shape_cast %6 : vector<1x11x288xbf16> to vector<11x288xbf16>
    %c1_9 = arith.constant 1 : index
    %c0_10 = arith.constant 0 : index
    %c0_11 = arith.constant 0 : index
    %8 = vector.load %arg3[%c1_9, %c0_10, %c0_11] : memref<9x11x11xbf16, #tpu.memory_space<vmem>>, vector<1x11x11xbf16>
    %9 = vector.shape_cast %8 : vector<1x11x11xbf16> to vector<11x11xbf16>
    %cst_12 = arith.constant dense<0.000000e+00> : vector<11x288xf32>
    %10 = tpu.matmul %9, %7, %cst_12 {dimension_numbers = #tpu.dot_dimension_numbers<[1], [0], [0], [1], [0, 0, 1, 1], [], []>} : vector<11x11xbf16>, vector<11x288xbf16>, vector<11x288xf32> -> vector<11x288xf32>
    %11 = arith.addf %5, %10 : vector<11x288xf32>
    %c0_13 = arith.constant 0 : index
    %c0_14 = arith.constant 0 : index
    %c2 = arith.constant 2 : index
    %12 = vector.load %arg1[%c0_13, %c0_14, %c2] : memref<1x11x326xbf16, #tpu.memory_space<vmem>>, vector<1x11x288xbf16>
    %13 = vector.shape_cast %12 : vector<1x11x288xbf16> to vector<11x288xbf16>
    %c2_15 = arith.constant 2 : index
    %c0_16 = arith.constant 0 : index
    %c0_17 = arith.constant 0 : index
    %14 = vector.load %arg3[%c2_15, %c0_16, %c0_17] : memref<9x11x11xbf16, #tpu.memory_space<vmem>>, vector<1x11x11xbf16>
    %15 = vector.shape_cast %14 : vector<1x11x11xbf16> to vector<11x11xbf16>
    %cst_18 = arith.constant dense<0.000000e+00> : vector<11x288xf32>
    %16 = tpu.matmul %15, %13, %cst_18 {dimension_numbers = #tpu.dot_dimension_numbers<[1], [0], [0], [1], [0, 0, 1, 1], [], []>} : vector<11x11xbf16>, vector<11x288xbf16>, vector<11x288xf32> -> vector<11x288xf32>
    %17 = arith.addf %11, %16 : vector<11x288xf32>
    %c0_19 = arith.constant 0 : index
    %c0_20 = arith.constant 0 : index
    %c18 = arith.constant 18 : index
    %18 = vector.load %arg1[%c0_19, %c0_20, %c18] : memref<1x11x326xbf16, #tpu.memory_space<vmem>>, vector<1x11x288xbf16>
    %19 = vector.shape_cast %18 : vector<1x11x288xbf16> to vector<11x288xbf16>
    %c3 = arith.constant 3 : index
    %c0_21 = arith.constant 0 : index
    %c0_22 = arith.constant 0 : index
    %20 = vector.load %arg3[%c3, %c0_21, %c0_22] : memref<9x11x11xbf16, #tpu.memory_space<vmem>>, vector<1x11x11xbf16>
    %21 = vector.shape_cast %20 : vector<1x11x11xbf16> to vector<11x11xbf16>
    %cst_23 = arith.constant dense<0.000000e+00> : vector<11x288xf32>
    %22 = tpu.matmul %21, %19, %cst_23 {dimension_numbers = #tpu.dot_dimension_numbers<[1], [0], [0], [1], [0, 0, 1, 1], [], []>} : vector<11x11xbf16>, vector<11x288xbf16>, vector<11x288xf32> -> vector<11x288xf32>
    %23 = arith.addf %17, %22 : vector<11x288xf32>
    %c0_24 = arith.constant 0 : index
    %c0_25 = arith.constant 0 : index
    %c19 = arith.constant 19 : index
    %24 = vector.load %arg1[%c0_24, %c0_25, %c19] : memref<1x11x326xbf16, #tpu.memory_space<vmem>>, vector<1x11x288xbf16>
    %25 = vector.shape_cast %24 : vector<1x11x288xbf16> to vector<11x288xbf16>
    %c4 = arith.constant 4 : index
    %c0_26 = arith.constant 0 : index
    %c0_27 = arith.constant 0 : index
    %26 = vector.load %arg3[%c4, %c0_26, %c0_27] : memref<9x11x11xbf16, #tpu.memory_space<vmem>>, vector<1x11x11xbf16>
    %27 = vector.shape_cast %26 : vector<1x11x11xbf16> to vector<11x11xbf16>
    %cst_28 = arith.constant dense<0.000000e+00> : vector<11x288xf32>
    %28 = tpu.matmul %27, %25, %cst_28 {dimension_numbers = #tpu.dot_dimension_numbers<[1], [0], [0], [1], [0, 0, 1, 1], [], []>} : vector<11x11xbf16>, vector<11x288xbf16>, vector<11x288xf32> -> vector<11x288xf32>
    %29 = arith.addf %23, %28 : vector<11x288xf32>
    %c0_29 = arith.constant 0 : index
    %c0_30 = arith.constant 0 : index
    %c20 = arith.constant 20 : index
    %30 = vector.load %arg1[%c0_29, %c0_30, %c20] : memref<1x11x326xbf16, #tpu.memory_space<vmem>>, vector<1x11x288xbf16>
    %31 = vector.shape_cast %30 : vector<1x11x288xbf16> to vector<11x288xbf16>
    %c5 = arith.constant 5 : index
    %c0_31 = arith.constant 0 : index
    %c0_32 = arith.constant 0 : index
    %32 = vector.load %arg3[%c5, %c0_31, %c0_32] : memref<9x11x11xbf16, #tpu.memory_space<vmem>>, vector<1x11x11xbf16>
    %33 = vector.shape_cast %32 : vector<1x11x11xbf16> to vector<11x11xbf16>
    %cst_33 = arith.constant dense<0.000000e+00> : vector<11x288xf32>
    %34 = tpu.matmul %33, %31, %cst_33 {dimension_numbers = #tpu.dot_dimension_numbers<[1], [0], [0], [1], [0, 0, 1, 1], [], []>} : vector<11x11xbf16>, vector<11x288xbf16>, vector<11x288xf32> -> vector<11x288xf32>
    %35 = arith.addf %29, %34 : vector<11x288xf32>
    %c0_34 = arith.constant 0 : index
    %c0_35 = arith.constant 0 : index
    %c36 = arith.constant 36 : index
    %36 = vector.load %arg1[%c0_34, %c0_35, %c36] : memref<1x11x326xbf16, #tpu.memory_space<vmem>>, vector<1x11x288xbf16>
    %37 = vector.shape_cast %36 : vector<1x11x288xbf16> to vector<11x288xbf16>
    %c6 = arith.constant 6 : index
    %c0_36 = arith.constant 0 : index
    %c0_37 = arith.constant 0 : index
    %38 = vector.load %arg3[%c6, %c0_36, %c0_37] : memref<9x11x11xbf16, #tpu.memory_space<vmem>>, vector<1x11x11xbf16>
    %39 = vector.shape_cast %38 : vector<1x11x11xbf16> to vector<11x11xbf16>
    %cst_38 = arith.constant dense<0.000000e+00> : vector<11x288xf32>
    %40 = tpu.matmul %39, %37, %cst_38 {dimension_numbers = #tpu.dot_dimension_numbers<[1], [0], [0], [1], [0, 0, 1, 1], [], []>} : vector<11x11xbf16>, vector<11x288xbf16>, vector<11x288xf32> -> vector<11x288xf32>
    %41 = arith.addf %35, %40 : vector<11x288xf32>
    %c0_39 = arith.constant 0 : index
    %c0_40 = arith.constant 0 : index
    %c37 = arith.constant 37 : index
    %42 = vector.load %arg1[%c0_39, %c0_40, %c37] : memref<1x11x326xbf16, #tpu.memory_space<vmem>>, vector<1x11x288xbf16>
    %43 = vector.shape_cast %42 : vector<1x11x288xbf16> to vector<11x288xbf16>
    %c7 = arith.constant 7 : index
    %c0_41 = arith.constant 0 : index
    %c0_42 = arith.constant 0 : index
    %44 = vector.load %arg3[%c7, %c0_41, %c0_42] : memref<9x11x11xbf16, #tpu.memory_space<vmem>>, vector<1x11x11xbf16>
    %45 = vector.shape_cast %44 : vector<1x11x11xbf16> to vector<11x11xbf16>
    %cst_43 = arith.constant dense<0.000000e+00> : vector<11x288xf32>
    %46 = tpu.matmul %45, %43, %cst_43 {dimension_numbers = #tpu.dot_dimension_numbers<[1], [0], [0], [1], [0, 0, 1, 1], [], []>} : vector<11x11xbf16>, vector<11x288xbf16>, vector<11x288xf32> -> vector<11x288xf32>
    %47 = arith.addf %41, %46 : vector<11x288xf32>
    %c0_44 = arith.constant 0 : index
    %c0_45 = arith.constant 0 : index
    %c38 = arith.constant 38 : index
    %48 = vector.load %arg1[%c0_44, %c0_45, %c38] : memref<1x11x326xbf16, #tpu.memory_space<vmem>>, vector<1x11x288xbf16>
    %49 = vector.shape_cast %48 : vector<1x11x288xbf16> to vector<11x288xbf16>
    %c8 = arith.constant 8 : index
    %c0_46 = arith.constant 0 : index
    %c0_47 = arith.constant 0 : index
    %50 = vector.load %arg3[%c8, %c0_46, %c0_47] : memref<9x11x11xbf16, #tpu.memory_space<vmem>>, vector<1x11x11xbf16>
    %51 = vector.shape_cast %50 : vector<1x11x11xbf16> to vector<11x11xbf16>
    %cst_48 = arith.constant dense<0.000000e+00> : vector<11x288xf32>
    %52 = tpu.matmul %51, %49, %cst_48 {dimension_numbers = #tpu.dot_dimension_numbers<[1], [0], [0], [1], [0, 0, 1, 1], [], []>} : vector<11x11xbf16>, vector<11x288xbf16>, vector<11x288xf32> -> vector<11x288xf32>
    %53 = arith.addf %47, %52 : vector<11x288xf32>
    %54 = vector.extract_strided_slice %53 {offsets = [10, 0], sizes = [1, 288], strides = [1, 1]} : vector<11x288xf32> to vector<1x288xf32>
    %cst_49 = arith.constant 9.000000e+00 : f32
    %55 = vector.broadcast %cst_49 : f32 to vector<1x288xf32>
    %56 = arith.addf %55, %54 : vector<1x288xf32>
    %57 = tpu.reciprocal %56 {approx = true} : vector<1x288xf32> -> vector<1x288xf32>
    %cst_50 = arith.constant 1.800000e+01 : f32
    %58 = vector.broadcast %cst_50 : f32 to vector<1x288xf32>
    %59 = arith.mulf %58, %57 : vector<1x288xf32>
    %60 = vector.extract_strided_slice %53 {offsets = [0, 0], sizes = [6, 288], strides = [1, 1]} : vector<11x288xf32> to vector<6x288xf32>
    %61 = arith.mulf %59, %0 : vector<1x288xf32>
    %62 = vector.broadcast %61 : vector<1x288xf32> to vector<6x288xf32>
    %63 = arith.mulf %60, %62 : vector<6x288xf32>
    %64 = vector.extract_strided_slice %53 {offsets = [6, 0], sizes = [4, 288], strides = [1, 1]} : vector<11x288xf32> to vector<4x288xf32>
    %65 = vector.broadcast %0 : vector<1x288xf32> to vector<4x288xf32>
    %66 = arith.mulf %64, %65 : vector<4x288xf32>
    %cst_51 = arith.constant dense<0.000000e+00> : vector<6xf32>
    %67 = vector.multi_reduction <add>, %63, %cst_51 [1] : vector<6x288xf32> to vector<6xf32>
    %68 = vector.shape_cast %67 : vector<6xf32> to vector<6x1xf32>
    %cst_52 = arith.constant 3.906250e-03 : f32
    %69 = vector.broadcast %cst_52 : f32 to vector<6x1xf32>
    %70 = arith.mulf %68, %69 : vector<6x1xf32>
    %cst_53 = arith.constant dense<0.000000e+00> : vector<4xf32>
    %71 = vector.multi_reduction <add>, %66, %cst_53 [1] : vector<4x288xf32> to vector<4xf32>
    %72 = vector.shape_cast %71 : vector<4xf32> to vector<4x1xf32>
    %cst_54 = arith.constant 3.906250e-03 : f32
    %73 = vector.broadcast %cst_54 : f32 to vector<4x1xf32>
    %74 = arith.mulf %72, %73 : vector<4x1xf32>
    %75 = vector.broadcast %70 : vector<6x1xf32> to vector<6x288xf32>
    %76 = arith.subf %63, %75 : vector<6x288xf32>
    %77 = vector.broadcast %74 : vector<4x1xf32> to vector<4x288xf32>
    %78 = arith.subf %66, %77 : vector<4x288xf32>
    %79 = vector.broadcast %0 : vector<1x288xf32> to vector<6x288xf32>
    %80 = arith.mulf %76, %79 : vector<6x288xf32>
    %81 = arith.mulf %80, %80 : vector<6x288xf32>
    %cst_55 = arith.constant dense<0.000000e+00> : vector<6xf32>
    %82 = vector.multi_reduction <add>, %81, %cst_55 [1] : vector<6x288xf32> to vector<6xf32>
    %83 = vector.shape_cast %82 : vector<6xf32> to vector<6x1xf32>
    %cst_56 = arith.constant 3.906250e-03 : f32
    %84 = vector.broadcast %cst_56 : f32 to vector<6x1xf32>
    %85 = arith.mulf %83, %84 : vector<6x1xf32>
    %86 = vector.broadcast %0 : vector<1x288xf32> to vector<4x288xf32>
    %87 = arith.mulf %78, %86 : vector<4x288xf32>
    %88 = arith.mulf %87, %87 : vector<4x288xf32>
    %cst_57 = arith.constant dense<0.000000e+00> : vector<4xf32>
    %89 = vector.multi_reduction <add>, %88, %cst_57 [1] : vector<4x288xf32> to vector<4xf32>
    %90 = vector.shape_cast %89 : vector<4xf32> to vector<4x1xf32>
    %cst_58 = arith.constant 3.906250e-03 : f32
    %91 = vector.broadcast %cst_58 : f32 to vector<4x1xf32>
    %92 = arith.mulf %90, %91 : vector<4x1xf32>
    %cst_59 = arith.constant 9.99999974E-6 : f32
    %93 = vector.broadcast %cst_59 : f32 to vector<6x1xf32>
    %94 = arith.addf %85, %93 : vector<6x1xf32>
    %95 = math.rsqrt %94 : vector<6x1xf32>
    %96 = vector.broadcast %95 : vector<6x1xf32> to vector<6x288xf32>
    %97 = arith.mulf %76, %96 : vector<6x288xf32>
    %cst_60 = arith.constant 0.000000e+00 : f32
    %98 = vector.broadcast %cst_60 : f32 to vector<6x288xf32>
    %99 = arith.maximumf %97, %98 : vector<6x288xf32>
    %c0_61 = arith.constant 0 : index
    %c0_62 = arith.constant 0 : index
    %c0_63 = arith.constant 0 : index
    %100 = vector.load %arg4[%c0_61, %c0_62, %c0_63] : memref<1x6x288xf32, #tpu.memory_space<vmem>>, vector<1x6x288xf32>
    %101 = vector.shape_cast %100 : vector<1x6x288xf32> to vector<6x288xf32>
    %102 = vector.shape_cast %99 : vector<6x288xf32> to vector<1x6x288xf32>
    tpu.vector_store %arg4[%c0_61, %c0_62, %c0_63], %102 {strides = array<i32>} : memref<1x6x288xf32, #tpu.memory_space<vmem>>, vector<1x6x288xf32>,
    %cst_64 = arith.constant 9.99999974E-6 : f32
    %103 = vector.broadcast %cst_64 : f32 to vector<4x1xf32>
    %104 = arith.addf %92, %103 : vector<4x1xf32>
    %105 = math.rsqrt %104 : vector<4x1xf32>
    %106 = vector.broadcast %105 : vector<4x1xf32> to vector<4x288xf32>
    %107 = arith.mulf %78, %106 : vector<4x288xf32>
    %cst_65 = arith.constant 0.000000e+00 : f32
    %108 = vector.broadcast %cst_65 : f32 to vector<4x288xf32>
    %109 = arith.maximumf %107, %108 : vector<4x288xf32>
    %c0_66 = arith.constant 0 : index
    %c0_67 = arith.constant 0 : index
    %c0_68 = arith.constant 0 : index
    %110 = vector.load %arg5[%c0_66, %c0_67, %c0_68] : memref<1x4x288xf32, #tpu.memory_space<vmem>>, vector<1x4x288xf32>
    %111 = vector.shape_cast %110 : vector<1x4x288xf32> to vector<4x288xf32>
    %112 = vector.shape_cast %109 : vector<4x288xf32> to vector<1x4x288xf32>
    tpu.vector_store %arg5[%c0_66, %c0_67, %c0_68], %112 {strides = array<i32>} : memref<1x4x288xf32, #tpu.memory_space<vmem>>, vector<1x4x288xf32>,
    %c0_69 = arith.constant 0 : index
    %c10 = arith.constant 10 : index
    %c0_70 = arith.constant 0 : index
    %113 = vector.load %arg1[%c0_69, %c10, %c0_70] : memref<1x11x326xbf16, #tpu.memory_space<vmem>>, vector<1x1x326xbf16>
    %114 = vector.shape_cast %113 : vector<1x1x326xbf16> to vector<1x326xbf16>
    %115 = arith.extf %114 : vector<1x326xbf16> to vector<1x326xf32>
    %116 = vector.extract_strided_slice %115 {offsets = [0, 0], sizes = [1, 324], strides = [1, 1]} : vector<1x326xf32> to vector<1x324xf32>
    %117 = vector.extract_strided_slice %115 {offsets = [0, 1], sizes = [1, 324], strides = [1, 1]} : vector<1x326xf32> to vector<1x324xf32>
    %118 = arith.maximumf %116, %117 : vector<1x324xf32>
    %119 = vector.extract_strided_slice %115 {offsets = [0, 2], sizes = [1, 324], strides = [1, 1]} : vector<1x326xf32> to vector<1x324xf32>
    %120 = arith.maximumf %118, %119 : vector<1x324xf32>
    %121 = vector.extract_strided_slice %120 {offsets = [0, 0], sizes = [1, 288], strides = [1, 1]} : vector<1x324xf32> to vector<1x288xf32>
    %122 = vector.extract_strided_slice %120 {offsets = [0, 18], sizes = [1, 288], strides = [1, 1]} : vector<1x324xf32> to vector<1x288xf32>
    %123 = arith.maximumf %121, %122 : vector<1x288xf32>
    %124 = vector.extract_strided_slice %120 {offsets = [0, 36], sizes = [1, 288], strides = [1, 1]} : vector<1x324xf32> to vector<1x288xf32>
    %125 = arith.maximumf %123, %124 : vector<1x288xf32>
    %c0_71 = arith.constant 0 : index
    %c0_72 = arith.constant 0 : index
    %c0_73 = arith.constant 0 : index
    %126 = vector.load %arg6[%c0_71, %c0_72, %c0_73] : memref<1x1x288xf32, #tpu.memory_space<vmem>>, vector<1x1x288xf32>
    %127 = vector.shape_cast %126 : vector<1x1x288xf32> to vector<1x288xf32>
    %128 = vector.shape_cast %125 : vector<1x288xf32> to vector<1x1x288xf32>
    tpu.vector_store %arg6[%c0_71, %c0_72, %c0_73], %128 {strides = array<i32>} : memref<1x1x288xf32, #tpu.memory_space<vmem>>, vector<1x1x288xf32>,
    return
  }
  func.func @transform_0(%arg0: i32) -> (i32, i32, i32) {
    %c0_i32 = arith.constant 0 : i32
    %c0_i32_0 = arith.constant 0 : i32
    %c0_i32_1 = arith.constant 0 : i32
    return %arg0, %c0_i32, %c0_i32_0 : i32, i32, i32
  }
  func.func @transform_1(%arg0: i32) -> (i32, i32) {
    %c0_i32 = arith.constant 0 : i32
    %c0_i32_0 = arith.constant 0 : i32
    %c0_i32_1 = arith.constant 0 : i32
    return %c0_i32, %c0_i32_0 : i32, i32
  }
  func.func @transform_2(%arg0: i32) -> (i32, i32, i32) {
    %c0_i32 = arith.constant 0 : i32
    %c0_i32_0 = arith.constant 0 : i32
    %c0_i32_1 = arith.constant 0 : i32
    %c0_i32_2 = arith.constant 0 : i32
    return %c0_i32, %c0_i32_0, %c0_i32_1 : i32, i32, i32
  }
  func.func @transform_3(%arg0: i32) -> (i32, i32, i32) {
    %c0_i32 = arith.constant 0 : i32
    %c0_i32_0 = arith.constant 0 : i32
    %c0_i32_1 = arith.constant 0 : i32
    return %arg0, %c0_i32, %c0_i32_0 : i32, i32, i32
  }
  func.func @transform_4(%arg0: i32) -> (i32, i32, i32) {
    %c0_i32 = arith.constant 0 : i32
    %c0_i32_0 = arith.constant 0 : i32
    %c0_i32_1 = arith.constant 0 : i32
    return %arg0, %c0_i32, %c0_i32_0 : i32, i32, i32
  }
  func.func @transform_5(%arg0: i32) -> (i32, i32, i32) {
    %c0_i32 = arith.constant 0 : i32
    %c0_i32_0 = arith.constant 0 : i32
    %c0_i32_1 = arith.constant 0 : i32
    return %arg0, %c0_i32, %c0_i32_0 : i32, i32, i32
  }
}

</mosaic_0001>

<bundles_post_ra>
// kernel: fconv_bn_activ.1
= control target key start
LH: loop header
LB: loop body
LE: loop exit
PB: predicated region body
PF: predicated region fallthrough
CT: control target
= control target key end

     0   :  { %s1974_s18 = smov 0   ;;  %s2300_s0 = inlined_call_operand.vmem [shape: bf16[2,11,326], index: 0, kind: input, shape index: {}]   ;;  %s2301_s1 = inlined_call_operand.vmem [shape: f32[1,288], index: 1, kind: input, shape index: {}]   ;;  %s2302_s2 = inlined_call_operand.vmem [shape: bf16[9,11,11], index: 2, kind: input, shape index: {}]   ;;  %s2303_s3 = inlined_call_operand.vmem [shape: f32[2,6,288], index: 3, kind: output, shape index: {0}]   ;;  %s2304_s4 = inlined_call_operand.vmem [shape: f32[2,4,288], index: 4, kind: output, shape index: {1}]   ;;  %s2305_s5 = inlined_call_operand.vmem [shape: f32[2,1,288], index: 5, kind: output, shape index: {2}]  }
   0x1 LB: > { %s1724_s19 = sadd.s32 4294967295, %s1929_s18   ;;  %p1728_p0 = scmp.ge.s32.totalorder %s1929_s18, 1  ;;  %s1929_s18 = sphi %s1974_s18, %s16_s18  }
   0x2   : > { %p192_p1 = scmp.lt.s32.totalorder %s1929_s18, 3 }
   0x4   : > { %p193_p2 = pnand %p1728_p0, %p192_p1 }
   0x5   : > { %p229_p3 = scmp.lt.s32.totalorder (!%p193_p2), %s1724_s19, 1  ;;  %s1934_s24 = smov (!%p193_p2), 127  }
   0x6   : > { %196 = sbr.rel (%p193_p2) target bundleno = 789 (0x315), region = 32  ;;  %s1935_s25 = smov (!%p193_p2), 126  }
   0x7   : > { %s1936_s26 = smov (!%p193_p2), 110   ;;  %s1937_s27 = smov (!%p193_p2), 109  }
   0x8   : > { %s1938_s28 = smov (!%p193_p2), 108   ;;  %s1939_s29 = smov (!%p193_p2), 92  }
   0x9   : > { %s1940_s30 = smov (!%p193_p2), 91   ;;  %s1941_s6 = smov (!%p193_p2), 90  }
   0xb   : > { %v1931_v0 = vmov 0.0   ;;  %s2307_s19 = smov (!%p229_p3, %s1724_s19), 1  ;;  %vm1932_vm0 = vmmov 0   ;;  %v1933_v1 = vmov 0   ;;  %vm290_vm1 = vcmask 1044480  }
   0xc   : > { %1800 = vmatprep.subr.bf16.mxu1 %v1931_v0  ;;  %s1854_s20 = smul.u32 24, %s2307_s19  ;;  %1802 = vmatprep.mubr.msk.bf16.mxu1 %vm1932_vm0, %v1931_v0  ;;  %vm283_vm2 = vcmask 1039360   ;;  %vm291_vm3 = vcmask 1045504   ;;  %v1942_v7 = vmov 65535   ;;  %v1902_v16 = vld [vmem:[%s2302_s2 + $0x8] sm:$0x3f]  }
   0xd   : > { %335 = vmatprep.mubr.bf16.mxu0 %v1933_v1  ;;  %v292_v8 = vsel %vm290_vm1, 4294967295, %v1942_v7  ;;  %vm502_vm4 = vcmask 1031168   ;;  %vm286_vm5 = vcmask 89088   ;;  %vm621_vm6 = vcmask 900096   ;;  %v1903_v28 = vld [vmem:[%s2302_s2] sm:$0x3f]  }
   0xe   : > { %s1993_s23 = scalar_lea.vmem %s2300_s0, %s1854_s20  ;;  %v2033_v11 = vsel %vm291_vm3, %v292_v8, 0  ;;  %vm740_vm7 = vcmask 891904   ;;  %v1904_v37 = vld [vmem:[%s2302_s2 + $0x10] sm:$0x3f]   ;;  %vm859_vm8 = vcmask 883712   ;;  %vm978_vm9 = vcmask 752640  }
   0xf   : > { %v1997_v2 = vld [vmem:[%s1993_s23 + $0x4] ss:$12 sps:$4 sm:$0x3f]   ;;  %v2000_v3 = vld [vmem:[%s1993_s23] ss:$12 sps:$4 sm:$0x3f]  }
  0x10   : > { %279 = vrot.lane.b32.xlu0 %v1997_v2, %s1934_s24  ;;  %v1901_v4 = vld [vmem:[%s1993_s23 + $0x8] ss:$12 sps:$4 sm:$0x3f]   ;;  %277 = vrot.lane.b32.xlu1 %v2000_v3, %s1934_s24  ;;  %v399_v17 = vand.u32 %v1997_v2, %v2033_v11  ;;  %v396_v23 = vand.u32 %v2000_v3, %v2033_v11  ;;  %v1905_v46 = vld [vmem:[%s2302_s2 + $0x18] sm:$0x3f]   ;;  %vm1097_vm10 = vcmask 744448  }
  0x11   : > { %v402_v19 = vand.u32 %v1901_v4, %v2033_v11  ;;  %v1906_v55 = vld [vmem:[%s2302_s2 + $0x20] sm:$0x3f]   ;;  %vm1216_vm11 = vcmask 736256   ;;  %vm1379_vm12 = vcmask 1047558   ;;  %vm1383_vm13 = vcmask 261126   ;;  %s1855_s11 = smul.u32 12, %s2307_s19 }
  0x12   : > { %vm1388_vm14 = vcmask 1041408   ;;  %vm1392_vm15 = vcmask 254976  }
  0x13   : > { %s243_s14 = scalar_lea.vmem %s2304_s4, %s1855_s11 }
  0x14   : > { %281 = vrot.lane.b32.xlu0 %v1901_v4, %s1934_s24  ;;  %498 = vrot.lane.b32.xlu1 %v1997_v2, %s1935_s25 }
  0x18   : > { %500 = vrot.lane.b32.xlu0 %v1901_v4, %s1935_s25  ;;  %496 = vrot.lane.b32.xlu1 %v2000_v3, %s1935_s25 }
  0x1c   : > { %617 = vrot.lane.b32.xlu0 %v1997_v2, %s1936_s26  ;;  %619 = vrot.lane.b32.xlu1 %v1901_v4, %s1936_s26 }
  0x20   : > { %615 = vrot.lane.b32.xlu0 %v2000_v3, %s1936_s26  ;;  %736 = vrot.lane.b32.xlu1 %v1997_v2, %s1937_s27 }
  0x24   : > { %738 = vrot.lane.b32.xlu0 %v1901_v4, %s1937_s27  ;;  %734 = vrot.lane.b32.xlu1 %v2000_v3, %s1937_s27 }
  0x28   : > { %855 = vrot.lane.b32.xlu0 %v1997_v2, %s1938_s28  ;;  %857 = vrot.lane.b32.xlu1 %v1901_v4, %s1938_s28 }
  0x2c   : > { %853 = vrot.lane.b32.xlu0 %v2000_v3, %s1938_s28  ;;  %974 = vrot.lane.b32.xlu1 %v1997_v2, %s1939_s29 }
  0x30   : > { %976 = vrot.lane.b32.xlu0 %v1901_v4, %s1939_s29  ;;  %972 = vrot.lane.b32.xlu1 %v2000_v3, %s1939_s29 }
  0x34   : > { %1093 = vrot.lane.b32.xlu0 %v1997_v2, %s1940_s30  ;;  %1095 = vrot.lane.b32.xlu1 %v1901_v4, %s1940_s30 }
  0x38   : > { %1091 = vrot.lane.b32.xlu0 %v2000_v3, %s1940_s30  ;;  %1212 = vrot.lane.b32.xlu1 %v1997_v2, %s1941_s6  ;;  %v1907_v2 = vld [vmem:[%s2302_s2 + $0x28] sm:$0x3f]  }
  0x3c   : > { %1214 = vrot.lane.b32.xlu0 %v1901_v4, %s1941_s6  ;;  %1210 = vrot.lane.b32.xlu1 %v2000_v3, %s1941_s6 }
  0x82   : > { %v280_v5 = vpop.permute.xlu0 %279  ;;  %v278_v6 = vpop.permute.xlu1 %277 }
  0x83   : > { %v284_v9 = vsel %vm283_vm2, %v278_v6, %v280_v5 }
  0x84   : > { %v295_v18 = vand.u32 %v2033_v11, %v284_v9 }
  0x86   : > { %v282_v10 = vpop.permute.xlu0 %281  ;;  %v499_v14 = vpop.permute.xlu1 %498 }
  0x87   : > { %v301_v12 = vand.u32 %v2033_v11, %v282_v10  ;;  %v285_v13 = vsel %vm283_vm2, %v280_v5, %v282_v10 }
  0x88   : > { %v298_v15 = vand.u32 %v2033_v11, %v285_v13 }
  0x89   : > { %1801 = vmatpush3.bf16.msra.mxu1 %v301_v12  ;;  %v1908_v12 = vld [vmem:[%s2302_s2 + $0x30] sm:$0x3f]  }
  0x8a   : > { %317 = vmatprep.subr.bf16.mxu0 %v298_v15  ;;  %v501_v20 = vpop.permute.xlu0 %500  ;;  %1806 = vmatprep.subr.bf16.mxu1 %v1931_v0  ;;  %v497_v22 = vpop.permute.xlu1 %496 }
  0x8b   : > { %318 = vmatpush1.bf16.msra.mxu0 %v295_v18  ;;  %v504_v21 = vsel %vm502_vm4, %v499_v14, %v501_v20  ;;  %v503_v27 = vsel %vm502_vm4, %v497_v22, %v499_v14  ;;  %v515_v29 = vand.u32 %v501_v20, %v2033_v11  ;;  %v1910_v22 = vld [vmem:[%s2302_s2 + $0x40] sm:$0x3f]  }
  0x8c   : > { %1803 = vmatmul.mubr.msk.bf16.vlgmr.msra.gmra.mxu1 %vm286_vm5, %v1902_v16  ;;  %418 = vmatprep.subr.bf16.mxu0 %v399_v17  ;;  %v512_v24 = vand.u32 %v504_v21, %v2033_v11  ;;  %v509_v32 = vand.u32 %v503_v27, %v2033_v11 }
  0x8d   : > { %1807 = vmatpush3.bf16.msra.mxu1 %v402_v19  ;;  %1808 = vmatprep.mubr.msk.bf16.mxu1 %vm1932_vm0, %v1931_v0  ;;  %v1909_v19 = vld [vmem:[%s2302_s2 + $0x38] sm:$0x3f]  }
  0x8e   : > { %1738 = vmatmul.mubr.msk.bf16.vlgmr.msra.gmra.mxu0 %vm286_vm5, %v1902_v16  ;;  %v618_v25 = vpop.permute.xlu0 %617  ;;  %1812 = vmatprep.subr.bf16.mxu1 %v1931_v0  ;;  %v620_v26 = vpop.permute.xlu1 %619 }
  0x8f   : > { %419 = vmatpush1.bf16.msra.mxu0 %v396_v23  ;;  %436 = vmatprep.mubr.bf16.mxu0 %v1933_v1  ;;  %v623_v30 = vsel %vm621_vm6, %v618_v25, %v620_v26  ;;  %v634_v38 = vand.u32 %v620_v26, %v2033_v11 }
  0x90   : > { %531 = vmatprep.subr.bf16.mxu0 %v512_v24  ;;  %v631_v33 = vand.u32 %v623_v30, %v2033_v11 }
  0x92   : > { %v616_v31 = vpop.permute.xlu0 %615  ;;  %v737_v34 = vpop.permute.xlu1 %736 }
  0x93   : > { %v622_v36 = vsel %vm621_vm6, %v616_v31, %v618_v25 }
  0x94   : > { %1809 = vmatmul.mubr.msk.bf16.vlgmr.msra.gmra.mxu1 %vm286_vm5, %v1903_v28  ;;  %v628_v41 = vand.u32 %v622_v36, %v2033_v11 }
  0x95   : > { %1813 = vmatpush3.bf16.msra.mxu1 %v515_v29  ;;  %1814 = vmatprep.mubr.msk.bf16.mxu1 %vm1932_vm0, %v1931_v0 }
  0x96   : > { %1741 = vmatmul.mubr.msk.bf16.vlgmr.msra.gmra.mxu0 %vm286_vm5, %v1903_v28  ;;  %1818 = vmatprep.subr.bf16.mxu1 %v1931_v0  ;;  %v739_v35 = vpop.permute.xlu0 %738  ;;  %v735_v40 = vpop.permute.xlu1 %734 }
  0x97   : > { %532 = vmatpush1.bf16.msra.mxu0 %v509_v32  ;;  %549 = vmatprep.mubr.bf16.mxu0 %v1933_v1  ;;  %v742_v39 = vsel %vm740_vm7, %v737_v34, %v739_v35  ;;  %v741_v45 = vsel %vm740_vm7, %v735_v40, %v737_v34  ;;  %v753_v47 = vand.u32 %v739_v35, %v2033_v11 }
  0x98   : > { %650 = vmatprep.subr.bf16.mxu0 %v631_v33  ;;  %v750_v42 = vand.u32 %v742_v39, %v2033_v11  ;;  %v747_v50 = vand.u32 %v741_v45, %v2033_v11 }
  0x9a   : > { %v856_v43 = vpop.permute.xlu0 %855  ;;  %v858_v44 = vpop.permute.xlu1 %857 }
  0x9b   : > { %v861_v48 = vsel %vm859_vm8, %v856_v43, %v858_v44  ;;  %v872_v56 = vand.u32 %v858_v44, %v2033_v11 }
  0x9c   : > { %1815 = vmatmul.mubr.msk.bf16.vlgmr.msra.gmra.mxu1 %vm286_vm5, %v1904_v37  ;;  %v869_v51 = vand.u32 %v861_v48, %v2033_v11 }
  0x9d   : > { %1819 = vmatpush3.bf16.msra.mxu1 %v634_v38  ;;  %1820 = vmatprep.mubr.msk.bf16.mxu1 %vm1932_vm0, %v1931_v0 }
  0x9e   : > { %1746 = vmatmul.mubr.msk.bf16.vlgmr.msra.gmra.mxu0 %vm286_vm5, %v1904_v37  ;;  %1824 = vmatprep.subr.bf16.mxu1 %v1931_v0  ;;  %v854_v49 = vpop.permute.xlu0 %853  ;;  %v975_v52 = vpop.permute.xlu1 %974 }
  0x9f   : > { %651 = vmatpush1.bf16.msra.mxu0 %v628_v41  ;;  %668 = vmatprep.mubr.bf16.mxu0 %v1933_v1  ;;  %v860_v54 = vsel %vm859_vm8, %v854_v49, %v856_v43 }
  0xa0   : > { %769 = vmatprep.subr.bf16.mxu0 %v750_v42  ;;  %v866_v59 = vand.u32 %v860_v54, %v2033_v11 }
  0xa2   : > { %v977_v53 = vpop.permute.xlu0 %976  ;;  %v973_v58 = vpop.permute.xlu1 %972 }
  0xa3   : > { %v980_v57 = vsel %vm978_vm9, %v975_v52, %v977_v53  ;;  %v979_v63 = vsel %vm978_vm9, %v973_v58, %v975_v52  ;;  %v991_v3 = vand.u32 %v977_v53, %v2033_v11 }
  0xa4   : > { %1821 = vmatmul.mubr.msk.bf16.vlgmr.msra.gmra.mxu1 %vm286_vm5, %v1905_v46  ;;  %v988_v60 = vand.u32 %v980_v57, %v2033_v11  ;;  %v985_v6 = vand.u32 %v979_v63, %v2033_v11 }
  0xa5   : > { %1825 = vmatpush3.bf16.msra.mxu1 %v753_v47  ;;  %1826 = vmatprep.mubr.msk.bf16.mxu1 %vm1932_vm0, %v1931_v0 }
  0xa6   : > { %1751 = vmatmul.mubr.msk.bf16.vlgmr.msra.gmra.mxu0 %vm286_vm5, %v1905_v46  ;;  %1830 = vmatprep.subr.bf16.mxu1 %v1931_v0  ;;  %v1094_v61 = vpop.permute.xlu0 %1093  ;;  %v1096_v62 = vpop.permute.xlu1 %1095 }
  0xa7   : > { %770 = vmatpush1.bf16.msra.mxu0 %v747_v50  ;;  %787 = vmatprep.mubr.bf16.mxu0 %v1933_v1  ;;  %v1099_v4 = vsel %vm1097_vm10, %v1094_v61, %v1096_v62  ;;  %v1110_v13 = vand.u32 %v1096_v62, %v2033_v11 }
  0xa8   : > { %888 = vmatprep.subr.bf16.mxu0 %v869_v51  ;;  %v1107_v7 = vand.u32 %v1099_v4, %v2033_v11 }
  0xaa   : > { %v1092_v5 = vpop.permute.xlu0 %1091  ;;  %v1213_v9 = vpop.permute.xlu1 %1212 }
  0xab   : > { %v1098_v10 = vsel %vm1097_vm10, %v1092_v5, %v1094_v61 }
  0xac   : > { %1827 = vmatmul.mubr.msk.bf16.vlgmr.msra.gmra.mxu1 %vm286_vm5, %v1906_v55  ;;  %v1104_v15 = vand.u32 %v1098_v10, %v2033_v11 }
  0xad   : > { %1831 = vmatpush3.bf16.msra.mxu1 %v872_v56  ;;  %1832 = vmatprep.mubr.msk.bf16.mxu1 %vm1932_vm0, %v1931_v0 }
  0xae   : > { %1756 = vmatmul.mubr.msk.bf16.vlgmr.msra.gmra.mxu0 %vm286_vm5, %v1906_v55  ;;  %1836 = vmatprep.subr.bf16.mxu1 %v1931_v0  ;;  %v1215_v8 = vpop.permute.xlu0 %1214  ;;  %v1211_v17 = vpop.permute.xlu1 %1210 }
  0xaf   : > { %889 = vmatpush1.bf16.msra.mxu0 %v866_v59  ;;  %906 = vmatprep.mubr.bf16.mxu0 %v1933_v1  ;;  %v1218_v14 = vsel %vm1216_vm11, %v1213_v9, %v1215_v8  ;;  %v1217_v18 = vsel %vm1216_vm11, %v1211_v17, %v1213_v9  ;;  %v1229_v20 = vand.u32 %v1215_v8, %v2033_v11 }
  0xb0   : > { %1007 = vmatprep.subr.bf16.mxu0 %v988_v60  ;;  %v1226_v16 = vand.u32 %v1218_v14, %v2033_v11  ;;  %v1223_v21 = vand.u32 %v1217_v18, %v2033_v11 }
  0xb4   : > { %1833 = vmatmul.mubr.msk.bf16.vlgmr.msra.gmra.mxu1 %vm286_vm5, %v1907_v2 }
  0xb5   : > { %1837 = vmatpush3.bf16.msra.mxu1 %v991_v3  ;;  %1838 = vmatprep.mubr.msk.bf16.mxu1 %vm1932_vm0, %v1931_v0 }
  0xb6   : > { %1761 = vmatmul.mubr.msk.bf16.vlgmr.msra.gmra.mxu0 %vm286_vm5, %v1907_v2  ;;  %1842 = vmatprep.subr.bf16.mxu1 %v1931_v0 }
  0xb7   : > { %1008 = vmatpush1.bf16.msra.mxu0 %v985_v6  ;;  %1025 = vmatprep.mubr.bf16.mxu0 %v1933_v1 }
  0xb8   : > { %1126 = vmatprep.subr.bf16.mxu0 %v1107_v7 }
  0xbc   : > { %1839 = vmatmul.mubr.msk.bf16.vlgmr.msra.gmra.mxu1 %vm286_vm5, %v1908_v12 }
  0xbd   : > { %1843 = vmatpush3.bf16.msra.mxu1 %v1110_v13  ;;  %1844 = vmatprep.mubr.msk.bf16.mxu1 %vm1932_vm0, %v1931_v0 }
  0xbe   : > { %1766 = vmatmul.mubr.msk.bf16.vlgmr.msra.gmra.mxu0 %vm286_vm5, %v1908_v12  ;;  %1848 = vmatprep.subr.bf16.mxu1 %v1931_v0 }
  0xbf   : > { %1127 = vmatpush1.bf16.msra.mxu0 %v1104_v15  ;;  %1144 = vmatprep.mubr.bf16.mxu0 %v1933_v1 }
  0xc0   : > { %1245 = vmatprep.subr.bf16.mxu0 %v1226_v16 }
  0xc4   : > { %1845 = vmatmul.mubr.msk.bf16.vlgmr.msra.gmra.mxu1 %vm286_vm5, %v1909_v19 }
  0xc5   : > { %1849 = vmatpush3.bf16.msra.mxu1 %v1229_v20  ;;  %1850 = vmatprep.mubr.msk.bf16.mxu1 %vm1932_vm0, %v1931_v0  ;;  %vm1373_vm0 = vcmask 259072  }
  0xc6   : > { %1771 = vmatmul.mubr.msk.bf16.vlgmr.msra.gmra.mxu0 %vm286_vm5, %v1909_v19 }
  0xc7   : > { %1246 = vmatpush1.bf16.msra.mxu0 %v1223_v21  ;;  %1263 = vmatprep.mubr.bf16.mxu0 %v1933_v1 }
  0xcc   : > { %1851 = vmatmul.mubr.msk.bf16.vlgmr.msra.gmra.mxu1 %vm286_vm5, %v1910_v22 }
  0xce   : > { %1776 = vmatmul.mubr.msk.bf16.vlgmr.msra.gmra.mxu0 %vm286_vm5, %v1910_v22  ;;  %v1331_v22 = vlaneseq }
  0xd0   : > { %vm1602_vm1 = vcmp.lt.s32.totalorder %v1331_v22, 288 }
 0x14c   : > { %v380_v11 = vpop.f32.mrf.mxu1 }
 0x14e   : > { %v337_v23 = vpop.f32.mrf.mxu0  ;;  %v1804_v24 = vpop.f32.mrf.mxu1 }
 0x150   : > { %v339_v25 = vpop.f32.mrf.mxu0  ;;  %v383_v26 = vpop.f32.mrf.mxu1 }
 0x152   : > { %v341_v27 = vpop.f32.mrf.mxu0  ;;  %v1805_v0 = vpop.f32.mrf.mxu1 }
 0x154   : > { %v343_v28 = vpop.f32.mrf.mxu0  ;;  %v481_v29 = vpop.f32.mrf.mxu1 }
 0x155   : > { %v482_v13 = vadd.f32 %v481_v29, %v380_v11 }
 0x156   : > { %v438_v30 = vpop.f32.mrf.mxu0  ;;  %v1810_v31 = vpop.f32.mrf.mxu1 }
 0x157   : > { %v439_v12 = vadd.f32 %v438_v30, %v337_v23 }
 0x158   : > { %v440_v1 = vpop.f32.mrf.mxu0  ;;  %v484_v32 = vpop.f32.mrf.mxu1 }
 0x159   : > { %v441_v16 = vadd.f32 %v440_v1, %v339_v25  ;;  %v485_v17 = vadd.f32 %v484_v32, %v383_v26  ;;  %v2157_v32 = vshrl.u32 %v1331_v22, 7 }
 0x15a   : > { %v442_v33 = vpop.f32.mrf.mxu0  ;;  %v1811_v34 = vpop.f32.mrf.mxu1 }
 0x15b   : > { %v443_v24 = vadd.f32 %v442_v33, %v341_v27 }
 0x15c   : > { %v444_v35 = vpop.f32.mrf.mxu0  ;;  %v594_v36 = vpop.f32.mrf.mxu1 }
 0x15d   : > { %v603_v19 = vadd.f32 %v594_v36, %v482_v13 }
 0x15e   : > { %v551_v37 = vpop.f32.mrf.mxu0  ;;  %v1816_v38 = vpop.f32.mrf.mxu1 }
 0x15f   : > { %v601_v18 = vadd.f32 %v551_v37, %v439_v12  ;;  %v445_v38 = vadd.f32 %v444_v35, %v343_v28 }
 0x160   : > { %v553_v39 = vpop.f32.mrf.mxu0  ;;  %v597_v40 = vpop.f32.mrf.mxu1 }
 0x161   : > { %v602_v0 = vadd.f32 %v553_v39, %v441_v16  ;;  %v606_v31 = vadd.f32 %v597_v40, %v485_v17 }
 0x162   : > { %v555_v41 = vpop.f32.mrf.mxu0  ;;  %v1817_v42 = vpop.f32.mrf.mxu1 }
 0x164   : > { %v557_v43 = vpop.f32.mrf.mxu0  ;;  %v713_v44 = vpop.f32.mrf.mxu1 }
 0x165   : > { %v722_v42 = vadd.f32 %v713_v44, %v603_v19  ;;  %v605_v30 = vadd.f32 %v557_v43, %v445_v38  ;;  %v1337_v44 = vsub.s32 1, %v2157_v32 }
 0x166   : > { %v670_v45 = vpop.f32.mrf.mxu0  ;;  %v1822_v46 = vpop.f32.mrf.mxu1 }
 0x167   : > { %v720_v34 = vadd.f32 %v670_v45, %v601_v18 }
 0x168   : > { %v672_v47 = vpop.f32.mrf.mxu0  ;;  %v716_v48 = vpop.f32.mrf.mxu1 }
 0x169   : > { %v721_v23 = vadd.f32 %v672_v47, %v602_v0  ;;  %v725_v11 = vadd.f32 %v716_v48, %v606_v31 }
 0x16a   : > { %v674_v49 = vpop.f32.mrf.mxu0  ;;  %v1823_v50 = vpop.f32.mrf.mxu1 }
 0x16c   : > { %v676_v51 = vpop.f32.mrf.mxu0  ;;  %v832_v52 = vpop.f32.mrf.mxu1 }
 0x16d   : > { %v841_v25 = vadd.f32 %v832_v52, %v722_v42  ;;  %v724_v39 = vadd.f32 %v676_v51, %v605_v30 }
 0x16e   : > { %v789_v53 = vpop.f32.mrf.mxu0  ;;  %v1828_v54 = vpop.f32.mrf.mxu1 }
 0x16f   : > { %v604_v54 = vadd.f32 %v555_v41, %v443_v24  ;;  %v839_v29 = vadd.f32 %v789_v53, %v720_v34  ;;  %v1333_v41 = vsub.s32 0, %v2157_v32 }
 0x170   : > { %v791_v55 = vpop.f32.mrf.mxu0  ;;  %v835_v56 = vpop.f32.mrf.mxu1 }
 0x171   : > { %v723_v36 = vadd.f32 %v674_v49, %v604_v54  ;;  %v840_v27 = vadd.f32 %v791_v55, %v721_v23  ;;  %v844_v33 = vadd.f32 %v835_v56, %v725_v11  ;;  %v2162_v49 = vsub.s32 2, %v2157_v32 }
 0x172   : > { %v793_v57 = vpop.f32.mrf.mxu0  ;;  %v1829_v58 = vpop.f32.mrf.mxu1 }
 0x173   : > { %v842_v45 = vadd.f32 %v793_v57, %v723_v36 }
 0x174   : > { %v795_v59 = vpop.f32.mrf.mxu0  ;;  %v951_v60 = vpop.f32.mrf.mxu1 }
 0x175   : > { %v960_v28 = vadd.f32 %v951_v60, %v841_v25  ;;  %v843_v52 = vadd.f32 %v795_v59, %v724_v39 }
 0x176   : > { %v908_v61 = vpop.f32.mrf.mxu0  ;;  %v1834_v62 = vpop.f32.mrf.mxu1 }
 0x177   : > { %v958_v37 = vadd.f32 %v908_v61, %v839_v29  ;;  %v249_v61 = vld [vmem:[%s2301_s1] sm:$0x7] }
 0x178   : > { %v910_v63 = vpop.f32.mrf.mxu0  ;;  %v954_v2 = vpop.f32.mrf.mxu1 }
 0x179   : > { %v959_v43 = vadd.f32 %v910_v63, %v840_v27  ;;  %v963_v47 = vadd.f32 %v954_v2, %v844_v33  ;;  %v2167_v2 = vrot.slane %v249_v61, %v1333_v41 }
 0x17a   : > { %v912_v3 = vpop.f32.mrf.mxu0  ;;  %v1835_v4 = vpop.f32.mrf.mxu1 }
 0x17b   : > { %v961_v55 = vadd.f32 %v912_v3, %v842_v45 }
 0x17c   : > { %v914_v5 = vpop.f32.mrf.mxu0  ;;  %v1070_v6 = vpop.f32.mrf.mxu1 }
 0x17d   : > { %v1079_v53 = vadd.f32 %v1070_v6, %v960_v28  ;;  %v962_v4 = vadd.f32 %v914_v5, %v843_v52  ;;  %v2169_v6 = vrot.slane %v249_v61, %v1337_v44 }
 0x17e   : > { %v1027_v7 = vpop.f32.mrf.mxu0  ;;  %v1840_v8 = vpop.f32.mrf.mxu1 }
 0x17f   : > { %v1077_v48 = vadd.f32 %v1027_v7, %v958_v37 }
 0x180   : > { %v1029_v9 = vpop.f32.mrf.mxu0  ;;  %v1073_v10 = vpop.f32.mrf.mxu1 }
 0x181   : > { %v1078_v51 = vadd.f32 %v1029_v9, %v959_v43  ;;  %v1082_v56 = vadd.f32 %v1073_v10, %v963_v47  ;;  %v2172_v9 = vrot.slane %v249_v61, %v2162_v49 }
 0x182   : > { %v1031_v14 = vpop.f32.mrf.mxu0  ;;  %v1841_v15 = vpop.f32.mrf.mxu1 }
 0x183   : > { %v1080_v7 = vadd.f32 %v1031_v14, %v961_v55 }
 0x184   : > { %v1033_v20 = vpop.f32.mrf.mxu0  ;;  %v1189_v21 = vpop.f32.mrf.mxu1 }
 0x185   : > { %v1198_v57 = vadd.f32 %v1189_v21, %v1079_v53  ;;  %v1081_v16 = vadd.f32 %v1033_v20, %v962_v4 }
 0x186   : > { %v1146_v46 = vpop.f32.mrf.mxu0  ;;  %v1846_v50 = vpop.f32.mrf.mxu1 }
 0x187   : > { %v1196_v60 = vadd.f32 %v1146_v46, %v1077_v48  ;;  %v1502_v48 = vld [vmem:[%s1993_s23 + $0x14] sm:$0x2] }
 0x188   : > { %v1148_v26 = vpop.f32.mrf.mxu0  ;;  %v1192_v1 = vpop.f32.mrf.mxu1 }
 0x189   : > { %v1197_v8 = vadd.f32 %v1148_v26, %v1078_v51  ;;  %v1201_v12 = vadd.f32 %v1192_v1, %v1082_v56  ;;  %v2203_v56 = vunpack.c.l.bf16 %v1502_v48 }
 0x18a   : > { %v1150_v35 = vpop.f32.mrf.mxu0  ;;  %v1847_v40 = vpop.f32.mrf.mxu1 }
 0x18b   : > { %v1199_v17 = vadd.f32 %v1150_v35, %v1080_v7 }
 0x18c   : > { %v1152_v58 = vpop.f32.mrf.mxu0  ;;  %v1308_v62 = vpop.f32.mrf.mxu1 }
 0x18d   : > { %v1317_v3 = vadd.f32 %v1308_v62, %v1198_v57  ;;  %v1200_v14 = vadd.f32 %v1152_v58, %v1081_v16  ;;  %v1501_v62 = vld [vmem:[%s1993_s23 + $0xc] sm:$0x22] }
 0x18e   : > { %v1265_v63 = vpop.f32.mrf.mxu0  ;;  %v1852_v59 = vpop.f32.mrf.mxu1  ;;  %v1503_v4 = vunpack.c.l.bf16 %v1501_v62  ;;  %v1504_v57 = vunpack.c.h.bf16 %v1501_v62 }
 0x18f   : > { %v1315_v13 = vadd.f32 %v1265_v63, %v1196_v60  ;;  %v2181_v38 = vmul.f32 %v2172_v9, %v1317_v3 }
 0x190   : > { %v1267_v10 = vpop.f32.mrf.mxu0  ;;  %v1311_v15 = vpop.f32.mrf.mxu1  ;;  %v1883_v7 = vpack.i.bf16 %v1504_v57, %v1503_v4 }
 0x191   : > { %v1316_v5 = vadd.f32 %v1267_v10, %v1197_v8  ;;  %v1320_v18 = vadd.f32 %v1311_v15, %v1201_v12  ;;  %v2175_v19 = vmul.f32 %v2167_v2, %v1315_v13  ;;  %v1384_v26 = vsel %vm1383_vm13, %v2181_v38, 0.0 }
 0x192   : > { %v1269_v21 = vpop.f32.mrf.mxu0  ;;  %v1853_v24 = vpop.f32.mrf.mxu1 }
 0x193   : > { %v2178_v0 = vmul.f32 %v2169_v6, %v1316_v5  ;;  %v1323_v31 = vadd.f32 9.0, %v1320_v18  ;;  %v1318_v34 = vadd.f32 %v1269_v21, %v1199_v17  ;;  %v1369_v54 = vmul.f32 %v2172_v9, %v1320_v18 }
 0x194   : > { %v1271_v42 = vpop.f32.mrf.mxu0  ;;  %v1380_v23 = vsel %vm1379_vm12, %v2175_v19, 0.0 }
 0x195   : > { %1911 = vrcp.f32 %v1323_v31  ;;  %v1321_v20 = vadd.f32 9.0, %v1318_v34  ;;  %v1367_v46 = vmul.f32 %v2167_v2, %v1318_v34  ;;  %v1319_v50 = vadd.f32 %v1271_v42, %v1200_v14 }
 0x196   : > { %v1381_v11 = vsel %vm1379_vm12, %v2178_v0, 0.0  ;;  %v1393_v37 = vsel %vm1392_vm15, %v1369_v54, 0.0 }
 0x197   : > { %1913 = vrcp.f32 %v1321_v20  ;;  %v1322_v29 = vadd.f32 9.0, %v1319_v50  ;;  %v1368_v30 = vmul.f32 %v2169_v6, %v1319_v50  ;;  %v1382_v25 = vadd.f32 %v1381_v11, %v1380_v23 }
 0x198   : > { %v1389_v36 = vsel %vm1388_vm14, %v1367_v46, 0.0 }
 0x199   : > { %1915 = vrcp.f32 %v1322_v29  ;;  %v1385_v1 = vadd.f32 %v1384_v26, %v1382_v25  ;;  %v1390_v27 = vsel %vm1388_vm14, %v1368_v30, 0.0 }
 0x19a   : > { %v1391_v33 = vadd.f32 %v1390_v27, %v1389_v36 }
 0x19b   : > { %1386 = vadd.xlane.f32.xlu0 %v1385_v1 }
 0x19c   : > { %v1394_v39 = vadd.f32 %v1393_v37, %v1391_v33 }
 0x19e   : > { %1395 = vadd.xlane.f32.xlu1 %v1394_v39 }
 0x1a2   : > { %v1912_v28 = vpop.eup %1911 }
 0x1a3   : > { %v1329_v35 = vmul.f32 18.0, %v1912_v28 }
 0x1a4   : > { %v1914_v40 = vpop.eup %1913 }
 0x1a5   : > { %v1327_v41 = vmul.f32 18.0, %v1914_v40  ;;  %v1348_v44 = vmul.f32 %v2172_v9, %v1329_v35 }
 0x1a6   : > { %v1916_v45 = vpop.eup %1915 }
 0x1a7   : > { %v1346_v43 = vmul.f32 %v2167_v2, %v1327_v41  ;;  %v1328_v47 = vmul.f32 18.0, %v1916_v45  ;;  %v1360_v58 = vrot.slane %v1348_v44, %v2162_v49 }
 0x1a9   : > { %v1347_v52 = vmul.f32 %v2169_v6, %v1328_v47  ;;  %v1352_v53 = vrot.slane %v1346_v43, %v2162_v49  ;;  %v1363_v61 = vmul.f32 %v1360_v58, %v1317_v3 }
 0x1ab   : > { %v1356_v55 = vrot.slane %v1347_v52, %v2162_v49  ;;  %v1361_v51 = vmul.f32 %v1352_v53, %v1315_v13  ;;  %v1374_v12 = vsel %vm1373_vm0, %v1363_v61, 0.0 }
 0x1ad   : > { %v1362_v60 = vmul.f32 %v1356_v55, %v1316_v5  ;;  %v1370_v63 = vsel %vm291_vm3, %v1361_v51, 0.0 }
 0x1af   : > { %v1371_v59 = vsel %vm291_vm3, %v1362_v60, 0.0  ;;  %1513 = vrot.lane.b32.xlu1 %v2203_v56, %s1934_s24 }
 0x1b0   : > { %v1372_v8 = vadd.f32 %v1371_v59, %v1370_v63 }
 0x1b2   : > { %v1375_v49 = vadd.f32 %v1374_v12, %v1372_v8 }
 0x1b3   : > { %1884 = vrot.lane.b32.xlu1 %v1883_v7, %s1935_s25 }
 0x1b4   : > { %1376 = vadd.xlane.f32.xlu0 %v1375_v49 }
 0x1ca   : > { %1879 = vrot.lane.b32.xlu0 %v1883_v7, %s1934_s24 }
 0x1ce   : > { %1528 = vrot.lane.b32.xlu0 %v2203_v56, %s1935_s25  ;;  %s238_s25 = scalar_lea.vmem %s2303_s3, %s1854_s20  ;;  %s1856_s20 = smul.u32 3, %s2307_s19 }
 0x1d0   : > { %s247_s10 = scalar_lea.vmem %s2305_s5, %s1856_s20 }
 0x227   : > { %v1396_v13 = vpop.xlane.xlu1 %1395 }
 0x228   : > { %v1398_v3 = vmul.f32 0.00390625, %v1396_v13 }
 0x22a   : > { %v2214_v10 = vsub.f32 %v1367_v46, %v1398_v3  ;;  %v2216_v15 = vsub.f32 %v1368_v30, %v1398_v3  ;;  %v2218_v16 = vsub.f32 %v1369_v54, %v1398_v3  ;;  %v1387_v54 = vpop.xlane.xlu0 %1386 }
 0x22b   : > { %v1514_v50 = vpop.permute.xlu1 %1513 }
 0x22c   : > { %v1425_v17 = vmul.f32 %v2214_v10, %v2167_v2  ;;  %v1426_v5 = vmul.f32 %v2216_v15, %v2169_v6  ;;  %v1427_v18 = vmul.f32 %v2218_v16, %v2172_v9  ;;  %v1523_v12 = vmax.f32 %v2203_v56, %v1514_v50 }
 0x22e   : > { %v1431_v21 = vmul.f32 %v1425_v17, %v1425_v17  ;;  %v1432_v24 = vmul.f32 %v1426_v5, %v1426_v5  ;;  %v1433_v14 = vmul.f32 %v1427_v18, %v1427_v18 }
 0x22f   : > { %v1885_v23 = vpop.permute.xlu1 %1884 }
 0x230   : > { %v1441_v31 = vsel %vm1388_vm14, %v1431_v21, 0.0  ;;  %v1442_v34 = vsel %vm1388_vm14, %v1432_v24, 0.0  ;;  %v1444_v20 = vsel %vm1392_vm15, %v1433_v14, 0.0  ;;  %v1887_v30 = vunpack.i.h.bf16 %v1885_v23 }
 0x231   : > { %v1443_v42 = vadd.f32 %v1442_v34, %v1441_v31  ;;  %v1886_v25 = vunpack.i.l.bf16 %v1885_v23 }
 0x233   : > { %v1445_v46 = vadd.f32 %v1444_v20, %v1443_v42  ;;  %v1531_v35 = vsel %vm502_vm4, %v1886_v25, %v1887_v30 }
 0x235   : > { %1446 = vadd.xlane.f32.xlu0 %v1445_v46 }
 0x23d   : > { %v1377_v11 = vpop.xlane.xlu0 %1376 }
 0x23e   : > { %v1378_v29 = vmul.f32 0.00390625, %v1377_v11 }
 0x240   : > { %v1399_v26 = vsub.f32 %v1361_v51, %v1378_v29  ;;  %v1400_v1 = vsub.f32 %v1362_v60, %v1378_v29  ;;  %v1401_v36 = vsub.f32 %v1363_v61, %v1378_v29 }
 0x241   : > { %v1880_v27 = vpop.permute.xlu0 %1879 }
 0x242   : > { %v1882_v33 = vunpack.i.h.bf16 %v1880_v27  ;;  %v1881_v37 = vunpack.i.l.bf16 %v1880_v27  ;;  %v1408_v39 = vmul.f32 %v1399_v26, %v2167_v2  ;;  %v1409_v28 = vmul.f32 %v1400_v1, %v2169_v6 }
 0x243   : > { %v1410_v40 = vmul.f32 %v1401_v36, %v2172_v9 }
 0x244   : > { %v1516_v41 = vsel %vm283_vm2, %v1881_v37, %v1882_v33  ;;  %v1517_v44 = vsel %vm283_vm2, %v1882_v33, %v1514_v50  ;;  %v1411_v45 = vmul.f32 %v1408_v39, %v1408_v39  ;;  %v1412_v43 = vmul.f32 %v1409_v28, %v1409_v28 }
 0x245   : > { %v1521_v47 = vmax.f32 %v1503_v4, %v1516_v41  ;;  %v1529_v48 = vpop.permute.xlu0 %1528  ;;  %v1522_v52 = vmax.f32 %v1504_v57, %v1517_v44  ;;  %v1413_v53 = vmul.f32 %v1410_v40, %v1410_v40  ;;  %v1397_v57 = vmul.f32 0.00390625, %v1387_v54 }
 0x246   : > { %v1532_v58 = vsel %vm502_vm4, %v1887_v30, %v1529_v48  ;;  %v1414_v62 = vsel %vm291_vm3, %v1411_v45, 0.0  ;;  %v1415_v55 = vsel %vm291_vm3, %v1412_v43, 0.0  ;;  %v1538_v3 = vmax.f32 %v1523_v12, %v1529_v48 }
 0x247   : > { %v2238_v51 = vmax.f32 %v1521_v47, %v1531_v35  ;;  %v2240_v60 = vmax.f32 %v1522_v52, %v1532_v58  ;;  %v1416_v61 = vadd.f32 %v1415_v55, %v1414_v62  ;;  %v1417_v63 = vsel %vm1373_vm0, %v1413_v53, 0.0 }
 0x248   : > { %v2247_v7 = vsub.f32 %v2175_v19, %v1397_v57  ;;  %v2250_v8 = vsub.f32 %v2178_v0, %v1397_v57  ;;  %v2258_v17 = vsub.f32 %v2181_v38, %v1397_v57  ;;  %v1943_v33 = vmov 1966171168  }
 0x249   : > { %v1418_v59 = vadd.f32 %v1417_v63, %v1416_v61  ;;  %v1888_v4 = vpack.i.bf16 %v2240_v60, %v2238_v51  ;;  %v1577_v37 = vunpack.c.l.s4 %v1943_v33  ;;  %vm1486_vm2 = vcmask 1045508  }
 0x24a   : > { %v1422_v49 = vmul.f32 %v2247_v7, %v2167_v2  ;;  %v1423_v13 = vmul.f32 %v2250_v8, %v2169_v6  ;;  %v1424_v0 = vmul.f32 %v2258_v17, %v2172_v9  ;;  %vm1487_vm3 = vmor %vm1388_vm14, %vm1486_vm2  ;;  %vm1499_vm4 = vcmask 257024  }
 0x24b   : > { %1419 = vadd.xlane.f32.xlu0 %v1418_v59  ;;  %1889 = vrot.lane.b32.xlu1 %v1888_v4, %s1936_s26  ;;  %v1578_v45 = vunpack.c.0.s8 %v1577_v37 }
 0x24c   : > { %v1428_v5 = vmul.f32 %v1422_v49, %v1422_v49  ;;  %v1429_v19 = vmul.f32 %v1423_v13, %v1423_v13  ;;  %v1430_v21 = vmul.f32 %v1424_v0, %v1424_v0 }
 0x24d   : > { %v1581_v55 = vsub.s32 %v1578_v45, %v2157_v32 }
 0x24e   : > { %v1434_v18 = vsel %vm1379_vm12, %v1428_v5, 0.0  ;;  %v1435_v56 = vsel %vm1379_vm12, %v1429_v19, 0.0  ;;  %v1437_v6 = vsel %vm1383_vm13, %v1430_v21, 0.0 }
 0x24f   : > { %v1436_v2 = vadd.f32 %v1435_v56, %v1434_v18 }
 0x251   : > { %v1438_v24 = vadd.f32 %v1437_v6, %v1436_v2 }
 0x261   : > { %1546 = vrot.lane.b32.xlu0 %v1538_v3, %s1936_s26 }
 0x26f   : > { %1439 = vadd.xlane.f32.xlu1 %v1438_v24 }
 0x280   : > { %1894 = vrot.lane.b32.xlu1 %v1888_v4, %s1939_s29 }
 0x284   : > { %1561 = vrot.lane.b32.xlu1 %v1538_v3, %s1939_s29 }
 0x2bd   : > { %v1890_v30 = vpop.permute.xlu1 %1889 }
 0x2be   : > { %v1447_v38 = vpop.xlane.xlu0 %1446  ;;  %v1892_v25 = vunpack.i.h.bf16 %v1890_v30 }
 0x2bf   : > { %v1449_v11 = vmul.f32 0.00390625, %v1447_v38 }
 0x2c1   : > { %v1462_v29 = vadd.f32 1e-05, %v1449_v11 }
 0x2d4   : > { %v1420_v14 = vpop.xlane.xlu0 %1419 }
 0x2d5   : > { %v1421_v31 = vmul.f32 0.00390625, %v1420_v14 }
 0x2d7   : > { %v1450_v34 = vadd.f32 1e-05, %v1421_v31 }
 0x2d8   : > { %v1547_v27 = vpop.permute.xlu0 %1546 }
 0x2d9   : > { %1917 = vrsqrt.f32 %v1450_v34  ;;  %v1550_v40 = vsel %vm621_vm6, %v1892_v25, %v1547_v27  ;;  %v1556_v52 = vmax.f32 %v1538_v3, %v1547_v27 }
 0x2da   : > { %1919 = vrsqrt.f32 %v1462_v29  ;;  %v1555_v48 = vmax.f32 %v2240_v60, %v1550_v40 }
 0x2e6   : > { %v1918_v9 = vpop.eup %1917 }
 0x2e7   : > { %v1452_v42 = vmul.f32 %v1918_v9, %v1399_v26  ;;  %v1453_v20 = vmul.f32 %v1918_v9, %v1400_v1  ;;  %v1454_v46 = vmul.f32 %v1918_v9, %v1401_v36  ;;  %v1891_v26 = vunpack.i.l.bf16 %v1890_v30  ;;  %v1920_v62 = vpop.eup %1919 }
 0x2e8   : > { %v1468_v57 = vmul.f32 %v1920_v62, %v2214_v10  ;;  %v1469_v12 = vmul.f32 %v1920_v62, %v2216_v15 }
 0x2e9   : > { %v1455_v50 = vmax.f32 %v1452_v42, 0.0  ;;  %v1456_v54 = vmax.f32 %v1453_v20, 0.0  ;;  %v1457_v23 = vmax.f32 %v1454_v46, 0.0  ;;  %v1549_v28 = vsel %vm621_vm6, %v1891_v26, %v1892_v25 }
 0x2ea   : > { %v1554_v47 = vmax.f32 %v2238_v51, %v1549_v28  ;;  %v1470_v51 = vmul.f32 %v1920_v62, %v2218_v16  ;;  %v1474_v3 = vmax.f32 %v1468_v57, 0.0  ;;  %v1475_v5 = vmax.f32 %v1469_v12, 0.0 }
 0x2eb   : > { %1458 = vst [vmem:[%s238_s25] sm:$0x3f] %v1455_v50  ;;  %1459 = vst [vmem:[%s238_s25 + $0x8] sm:$0x3f] %v1456_v54 }
 0x2ec   : > { %1460 = vst.msk [vmem:[%s238_s25 + $0x10] sm:$0x3f] %vm1373_vm0, %v1457_v23  ;;  %v1476_v10 = vmax.f32 %v1470_v51, 0.0  ;;  %v1485_v16 = vcombine.low %v1474_v3, %v1475_v5 }
 0x2f8   : > { %v1440_v1 = vpop.xlane.xlu1 %1439 }
 0x2f9   : > { %v1448_v36 = vmul.f32 0.00390625, %v1440_v1 }
 0x2fb   : > { %v1461_v39 = vadd.f32 1e-05, %v1448_v36 }
 0x2fc   : > { %v1895_v35 = vpop.permute.xlu1 %1894 }
 0x2fd   : > { %1921 = vrsqrt.f32 %v1461_v39  ;;  %v1897_v41 = vunpack.i.h.bf16 %v1895_v35  ;;  %v1896_v44 = vunpack.i.l.bf16 %v1895_v35 }
 0x2ff   : > { %v1564_v43 = vsel %vm978_vm9, %v1896_v44, %v1897_v41 }
 0x300   : > { %v1562_v53 = vpop.permute.xlu1 %1561  ;;  %v1569_v61 = vmax.f32 %v1554_v47, %v1564_v43 }
 0x301   : > { %v1565_v58 = vsel %vm978_vm9, %v1897_v41, %v1562_v53  ;;  %v1571_v59 = vmax.f32 %v1556_v52, %v1562_v53 }
 0x302   : > { %v1570_v63 = vmax.f32 %v1555_v48, %v1565_v58 }
 0x303   : > { %v1589_v13 = vrot.slane %v1571_v59, %v1581_v55 }
 0x304   : > { %v1575_v4 = vcombine.low %v1569_v61, %v1570_v63 }
 0x306   : > { %v1582_v49 = vrot.slane %v1575_v4, %v1581_v55 }
 0x308   : > { %v1590_v60 = vcombine.low %v1582_v49, %v1589_v13 }
 0x30a   : > { %v1922_v19 = vpop.eup %1921  ;;  %v1597_v0 = vrot.slane %v1590_v60, %v1581_v55 }
 0x30b   : > { %v1465_v32 = vmul.f32 %v1922_v19, %v2247_v7  ;;  %v1466_v18 = vmul.f32 %v1922_v19, %v2250_v8  ;;  %v1467_v56 = vmul.f32 %v1922_v19, %v2258_v17  ;;  %v1490_v8 = vrot.slane %v1485_v16, 6 }
 0x30c   : > { %v1598_v15 = vcombine.high %v1597_v0, %v1597_v0  ;;  %v1494_v17 = vrot.slane %v1476_v10, 6 }
 0x30d   : > { %v1471_v21 = vmax.f32 %v1465_v32, 0.0  ;;  %v1472_v2 = vmax.f32 %v1466_v18, 0.0  ;;  %v1473_v6 = vmax.f32 %v1467_v56, 0.0 }
 0x30e   : > { %1604 = vst.msk [vmem:[%s247_s10] sm:$0x7] %vm1602_vm1, %v1598_v15 }
 0x30f   : > { %v1483_v7 = vcombine.high %v1471_v21, %v1472_v2  ;;  %v1484_v24 = vcombine.high %v1473_v6, %v1473_v6 }
 0x311   : > { %v1778_v22 = vrot.slane %v1483_v7, 10  ;;  %v1779_v38 = vrot.slane %v1484_v24, 10 }
 0x313   : > { %v1491_v14 = vsel %vm1487_vm3, %v1778_v22, %v1490_v8  ;;  %v1495_v31 = vsel %vm1487_vm3, %v1779_v38, %v1494_v17 }
 0x314   : > { %1498 = vst [vmem:[%s243_s14] sm:$0xff] %v1491_v14  ;;  %1500 = vst.msk [vmem:[%s243_s14 + $0x8] sm:$0xf] %vm1499_vm4, %v1495_v31 }
 0x315 PF: > { %s16_s18 = sadd.s32 1, %s1929_s18  }
 0x316   : > { %p13_p4 = scmp.ge.s32.totalorder %s16_s18, 4  }
 0x318   :  { %15 = sbr.rel (!%p13_p4) target bundleno = 1 (0x1), region = 94 }

</bundles_post_ra>
